<compile_context>
chip_gen: v7x
topology: tpu7x:2x2x1
jax: 0.10.0
libtpu: 0.0.40
codegen_flags: <defaults>
</compile_context>

<pallas_src>
import jax
import jax.numpy as jnp
from jax.experimental import pallas as pl
from jax.experimental.pallas import tpu as pltpu

IN_DIM = 28 * 28   # 784
HID = 64
OUT_DIM = 10


def _round_up(n, m):
    return ((n + m - 1) // m) * m


def ddnet_kernel(x_ref, w0_ref, wd_ref, w2_ref, o_ref):
    # x: (TB, 784) bf16, w0: (784, 64) bf16, wd: (64, 64) bf16, w2: (64, 10) bf16
    # All matmuls feed the MXU with bf16 inputs and f32 accumulation;
    # activations are re-cast to bf16 only at MXU inputs, while `c` and the
    # elementwise multiplies stay in f32.
    h = jnp.dot(x_ref[...], w0_ref[...], preferred_element_type=jnp.float32)
    c = h
    # for i in range(2): x = dd(x) * c   (small fixed trip count -> unrolled)
    h = jnp.dot(h.astype(jnp.bfloat16), wd_ref[...],
                preferred_element_type=jnp.float32) * c
    h = jnp.dot(h.astype(jnp.bfloat16), wd_ref[...],
                preferred_element_type=jnp.float32) * c
    o_ref[...] = jnp.dot(h.astype(jnp.bfloat16), w2_ref[...],
                         preferred_element_type=jnp.float32).astype(o_ref.dtype)


def ddnet_forward(x, w0_t, wd_t, w2_t):
    B = x.shape[0]
    # Adaptive batch tile (see header): single tile for small B, 1024-row tiles
    # (pipelined + megacore-parallel) for large B.
    if B <= 1024:
        TB = _round_up(max(B, 1), 8)
        Bp = TB
    else:
        TB = 1024
        Bp = _round_up(B, TB)

    x_bf16 = x.astype(jnp.bfloat16)
    if Bp != B:
        x_bf16 = jnp.pad(x_bf16, ((0, Bp - B), (0, 0)))

    w0 = w0_t.astype(jnp.bfloat16)
    wd = wd_t.astype(jnp.bfloat16)
    w2 = w2_t.astype(jnp.bfloat16)

    out = pl.pallas_call(
        ddnet_kernel,
        out_shape=jax.ShapeDtypeStruct((Bp, OUT_DIM), jnp.float32),
        grid_spec=pltpu.PrefetchScalarGridSpec(
            num_scalar_prefetch=0,
            grid=(Bp // TB,),
            in_specs=[
                # x: one (TB, 784) tile per grid step -> double-buffered DMA.
                pl.BlockSpec((TB, IN_DIM), lambda i: (i, 0)),
                # Weights: constant index maps -> loaded once, VMEM-resident.
                pl.BlockSpec((IN_DIM, HID), lambda i: (0, 0)),
                pl.BlockSpec((HID, HID), lambda i: (0, 0)),
                pl.BlockSpec((HID, OUT_DIM), lambda i: (0, 0)),
            ],
            out_specs=pl.BlockSpec((TB, OUT_DIM), lambda i: (i, 0)),
        ),
        compiler_params=pltpu.CompilerParams(
            dimension_semantics=("parallel",),
        ),
    )(x_bf16, w0, wd, w2)

    return out[:B]


def reference_forward(x, w0_t, wd_t, w2_t):
    # Pure-JAX reference mirroring the kernel's precision policy exactly
    # (bf16 MXU inputs, f32 accumulation, f32 elementwise multiply).
    xb = x.astype(jnp.bfloat16)
    w0 = w0_t.astype(jnp.bfloat16)
    wd = wd_t.astype(jnp.bfloat16)
    w2 = w2_t.astype(jnp.bfloat16)
    h = jnp.dot(xb, w0, preferred_element_type=jnp.float32)
    c = h
    for _ in range(2):
        h = jnp.dot(h.astype(jnp.bfloat16), wd,
                    preferred_element_type=jnp.float32) * c
    return jnp.dot(h.astype(jnp.bfloat16), w2,
                   preferred_element_type=jnp.float32)


if __name__ == "__main__":
    key = jax.random.PRNGKey(0)
    k_x, k0, kd, k2 = jax.random.split(key, 4)

    B = 2
    x = jax.random.normal(k_x, (B, IN_DIM), dtype=jnp.float32)

    # Deterministic "kaiming-uniform-like" init; stored directly as (in, out),
    # i.e. already transposed relative to PyTorch's (out, in) weight layout.
    def init(k, fan_in, fan_out):
        bound = 1.0 / jnp.sqrt(jnp.float32(fan_in))
        return jax.random.uniform(
            k, (fan_in, fan_out), dtype=jnp.float32, minval=-bound, maxval=bound
        )

    w0_t = init(k0, IN_DIM, HID)   # fc0.weight.T
    wd_t = init(kd, HID, HID)      # dd.weight.T
    w2_t = init(k2, HID, OUT_DIM)  # fc2.weight.T

    out = ddnet_forward(x, w0_t, wd_t, w2_t)
    out = jax.block_until_ready(out)

    ref = reference_forward(x, w0_t, wd_t, w2_t)
    assert out.shape == (B, OUT_DIM)
    assert jnp.allclose(out, ref, atol=1e-3, rtol=1e-3), "mismatch vs reference"

    print("KERNEL_OK")
</pallas_src>

<mosaic_0001>
module attributes {stable_mosaic.version = 11 : i64} {
  func.func @ddnet_kernel(%arg0: i32, %arg1: memref<8x784xbf16, #tpu.memory_space<vmem>>, %arg2: memref<784x64xbf16, #tpu.memory_space<vmem>>, %arg3: memref<64x64xbf16, #tpu.memory_space<vmem>>, %arg4: memref<64x10xbf16, #tpu.memory_space<vmem>>, %arg5: memref<8x10xf32, #tpu.memory_space<vmem>>) attributes {dimension_semantics = [#tpu.dimension_semantics<parallel>], iteration_bounds = array<i64: 1>, scalar_prefetch = 0 : i64, scratch_operands = 0 : i64, tpu.core_type = #tpu.core_type<tc>, window_params = [{transform_indices = @transform_0, window_bounds = array<i64: 8, 784>}, {pipeline_mode = #tpu.pipeline_mode<synchronous>, transform_indices = @transform_1, window_bounds = array<i64: 784, 64>}, {pipeline_mode = #tpu.pipeline_mode<synchronous>, transform_indices = @transform_2, window_bounds = array<i64: 64, 64>}, {pipeline_mode = #tpu.pipeline_mode<synchronous>, transform_indices = @transform_3, window_bounds = array<i64: 64, 10>}, {transform_indices = @transform_4, window_bounds = array<i64: 8, 10>}]} {
    %c0 = arith.constant 0 : index
    %c0_0 = arith.constant 0 : index
    %0 = vector.load %arg1[%c0, %c0_0] : memref<8x784xbf16, #tpu.memory_space<vmem>>, vector<8x784xbf16>
    %c0_1 = arith.constant 0 : index
    %c0_2 = arith.constant 0 : index
    %1 = vector.load %arg2[%c0_1, %c0_2] : memref<784x64xbf16, #tpu.memory_space<vmem>>, vector<784x64xbf16>
    %cst = arith.constant dense<0.000000e+00> : vector<8x64xf32>
    %2 = tpu.matmul %0, %1, %cst {dimension_numbers = #tpu.dot_dimension_numbers<[1], [0], [0], [1], [0, 0, 1, 1], [], []>} : vector<8x784xbf16>, vector<784x64xbf16>, vector<8x64xf32> -> vector<8x64xf32>
    %3 = arith.truncf %2 : vector<8x64xf32> to vector<8x64xbf16>
    %c0_3 = arith.constant 0 : index
    %c0_4 = arith.constant 0 : index
    %4 = vector.load %arg3[%c0_3, %c0_4] : memref<64x64xbf16, #tpu.memory_space<vmem>>, vector<64x64xbf16>
    %cst_5 = arith.constant dense<0.000000e+00> : vector<8x64xf32>
    %5 = tpu.matmul %3, %4, %cst_5 {dimension_numbers = #tpu.dot_dimension_numbers<[1], [0], [0], [1], [0, 0, 1, 1], [], []>} : vector<8x64xbf16>, vector<64x64xbf16>, vector<8x64xf32> -> vector<8x64xf32>
    %6 = arith.mulf %5, %2 : vector<8x64xf32>
    %7 = arith.truncf %6 : vector<8x64xf32> to vector<8x64xbf16>
    %c0_6 = arith.constant 0 : index
    %c0_7 = arith.constant 0 : index
    %8 = vector.load %arg3[%c0_6, %c0_7] : memref<64x64xbf16, #tpu.memory_space<vmem>>, vector<64x64xbf16>
    %cst_8 = arith.constant dense<0.000000e+00> : vector<8x64xf32>
    %9 = tpu.matmul %7, %8, %cst_8 {dimension_numbers = #tpu.dot_dimension_numbers<[1], [0], [0], [1], [0, 0, 1, 1], [], []>} : vector<8x64xbf16>, vector<64x64xbf16>, vector<8x64xf32> -> vector<8x64xf32>
    %10 = arith.mulf %9, %2 : vector<8x64xf32>
    %11 = arith.truncf %10 : vector<8x64xf32> to vector<8x64xbf16>
    %c0_9 = arith.constant 0 : index
    %c0_10 = arith.constant 0 : index
    %12 = vector.load %arg4[%c0_9, %c0_10] : memref<64x10xbf16, #tpu.memory_space<vmem>>, vector<64x10xbf16>
    %cst_11 = arith.constant dense<0.000000e+00> : vector<8x10xf32>
    %13 = tpu.matmul %11, %12, %cst_11 {dimension_numbers = #tpu.dot_dimension_numbers<[1], [0], [0], [1], [0, 0, 1, 1], [], []>} : vector<8x64xbf16>, vector<64x10xbf16>, vector<8x10xf32> -> vector<8x10xf32>
    %c0_12 = arith.constant 0 : index
    %c0_13 = arith.constant 0 : index
    %14 = vector.load %arg5[%c0_12, %c0_13] : memref<8x10xf32, #tpu.memory_space<vmem>>, vector<8x10xf32>
    tpu.vector_store %arg5[%c0_12, %c0_13], %13 {strides = array<i32>} : memref<8x10xf32, #tpu.memory_space<vmem>>, vector<8x10xf32>,
    return
  }
  func.func @transform_0(%arg0: i32) -> (i32, i32) {
    %c0_i32 = arith.constant 0 : i32
    %c0_i32_0 = arith.constant 0 : i32
    return %arg0, %c0_i32 : i32, i32
  }
  func.func @transform_1(%arg0: i32) -> (i32, i32) {
    %c0_i32 = arith.constant 0 : i32
    %c0_i32_0 = arith.constant 0 : i32
    %c0_i32_1 = arith.constant 0 : i32
    return %c0_i32, %c0_i32_0 : i32, i32
  }
  func.func @transform_2(%arg0: i32) -> (i32, i32) {
    %c0_i32 = arith.constant 0 : i32
    %c0_i32_0 = arith.constant 0 : i32
    %c0_i32_1 = arith.constant 0 : i32
    return %c0_i32, %c0_i32_0 : i32, i32
  }
  func.func @transform_3(%arg0: i32) -> (i32, i32) {
    %c0_i32 = arith.constant 0 : i32
    %c0_i32_0 = arith.constant 0 : i32
    %c0_i32_1 = arith.constant 0 : i32
    return %c0_i32, %c0_i32_0 : i32, i32
  }
  func.func @transform_4(%arg0: i32) -> (i32, i32) {
    %c0_i32 = arith.constant 0 : i32
    %c0_i32_0 = arith.constant 0 : i32
    return %arg0, %c0_i32 : i32, i32
  }
}

</mosaic_0001>

<bundles_post_ra>
// kernel: tpu_custom_call.1
= control target key start
LH: loop header
LB: loop body
LE: loop exit
PB: predicated region body
PF: predicated region fallthrough
CT: control target
= control target key end

     0   :  { %v1102_v40 = vmov 0.0   ;;  %vm1103_vm0 = vmmov 0   ;;  %vm439_vm1 = vcmask 130048   ;;  %s1349_s0 = inlined_call_operand.vmem [shape: bf16[8,784], index: 0, kind: input, shape index: {}]   ;;  %s1350_s1 = inlined_call_operand.vmem [shape: bf16[784,64], index: 1, kind: input, shape index: {}]   ;;  %s1351_s2 = inlined_call_operand.vmem [shape: bf16[64,64], index: 2, kind: input, shape index: {}]   ;;  %s1352_s3 = inlined_call_operand.vmem [shape: bf16[64,10], index: 3, kind: input, shape index: {}]   ;;  %s1353_s4 = inlined_call_operand.hbm [shape: f32[8,10], index: 4, kind: output, shape index: {}]  }
   0x1   :  { %v1014_v0 = vld [vmem:[%s1350_s1 + $0x40] sm:$0xff]   ;;  %v1018_v4 = vld [vmem:[%s1350_s1 + $0x48] sm:$0xff]   ;;  %v1022_v8 = vld [vmem:[%s1350_s1 + $0x50] sm:$0xff]  }
   0x2   :  { %v1015_v1 = vld [vmem:[%s1350_s1 + $0xc0] sm:$0xff]   ;;  %886 = vmatprep.subr.bf16.mxu0 %v1014_v0  ;;  %v1019_v5 = vld [vmem:[%s1350_s1 + $0xc8] sm:$0xff]   ;;  %v1023_v9 = vld [vmem:[%s1350_s1 + $0xd0] sm:$0xff]  }
   0x3   :  { %v1016_v2 = vld [vmem:[%s1350_s1] sm:$0xff]   ;;  %908 = vmatprep.subr.bf16.mxu1 %v1015_v1  ;;  %v1020_v6 = vld [vmem:[%s1350_s1 + $0x8] sm:$0xff]   ;;  %v1024_v10 = vld [vmem:[%s1350_s1 + $0x10] sm:$0xff]  }
   0x4   :  { %v1017_v3 = vld [vmem:[%s1350_s1 + $0x80] sm:$0xff]   ;;  %887 = vmatpush3.bf16.msra.mxu0 %v1016_v2  ;;  %v1021_v7 = vld [vmem:[%s1350_s1 + $0x88] sm:$0xff]   ;;  %v1025_v11 = vld [vmem:[%s1350_s1 + $0x90] sm:$0xff]  }
   0x5   :  { %909 = vmatpush3.bf16.msra.mxu1 %v1017_v3  ;;  %888 = vmatprep.subr.bf16.mxu0 %v1018_v4  ;;  %v1026_v12 = vld [vmem:[%s1350_s1 + $0x58] sm:$0xff]   ;;  %v1030_v16 = vld [vmem:[%s1350_s1 + $0x60] sm:$0xff]   ;;  %v1034_v20 = vld [vmem:[%s1350_s1 + $0x68] sm:$0xff]  }
   0x6   :  { %910 = vmatprep.subr.bf16.mxu1 %v1019_v5  ;;  %v1027_v13 = vld [vmem:[%s1350_s1 + $0xd8] sm:$0xff]   ;;  %v1031_v17 = vld [vmem:[%s1350_s1 + $0xe0] sm:$0xff]   ;;  %v1035_v21 = vld [vmem:[%s1350_s1 + $0xe8] sm:$0xff]  }
   0x7   :  { %v1028_v14 = vld [vmem:[%s1350_s1 + $0x18] sm:$0xff]   ;;  %v1032_v18 = vld [vmem:[%s1350_s1 + $0x20] sm:$0xff]   ;;  %v1036_v22 = vld [vmem:[%s1350_s1 + $0x28] sm:$0xff]  }
   0x8   :  { %889 = vmatpush3.bf16.msra.mxu0 %v1020_v6  ;;  %v1029_v15 = vld [vmem:[%s1350_s1 + $0x98] sm:$0xff]   ;;  %v1033_v19 = vld [vmem:[%s1350_s1 + $0xa0] sm:$0xff]   ;;  %v1037_v23 = vld [vmem:[%s1350_s1 + $0xa8] sm:$0xff]  }
   0x9   :  { %911 = vmatpush3.bf16.msra.mxu1 %v1021_v7  ;;  %890 = vmatprep.subr.bf16.mxu0 %v1022_v8  ;;  %v1038_v24 = vld [vmem:[%s1350_s1 + $0x70] sm:$0xff]   ;;  %v1042_v28 = vld [vmem:[%s1350_s1 + $0x78] sm:$0xff]   ;;  %v19_v32 = vld [vmem:[%s1349_s0] sm:$0xff] }
   0xa   :  { %912 = vmatprep.subr.bf16.mxu1 %v1023_v9  ;;  %v1039_v25 = vld [vmem:[%s1350_s1 + $0xf0] sm:$0xff]   ;;  %v1043_v29 = vld [vmem:[%s1350_s1 + $0xf8] sm:$0xff]   ;;  %v20_v33 = vld [vmem:[%s1349_s0 + $0x8] sm:$0xff]  ;;  %v818_v34 = vcombine.low %v19_v32, %v19_v32  ;;  %v819_v35 = vcombine.high %v19_v32, %v19_v32 }
   0xb   :  { %v1040_v26 = vld [vmem:[%s1350_s1 + $0x30] sm:$0xff]   ;;  %v1044_v30 = vld [vmem:[%s1350_s1 + $0x38] sm:$0xff]   ;;  %v820_v36 = vcombine.low %v20_v33, %v20_v33  ;;  %v821_v37 = vcombine.high %v20_v33, %v20_v33  ;;  %v1050_v38 = vld [vmem:[%s1350_s1 + $0x140] sm:$0xff]  }
   0xc   :  { %891 = vmatpush3.bf16.msra.mxu0 %v1024_v10  ;;  %v1041_v27 = vld [vmem:[%s1350_s1 + $0xb0] sm:$0xff]   ;;  %v1045_v31 = vld [vmem:[%s1350_s1 + $0xb8] sm:$0xff]   ;;  %v1051_v39 = vld [vmem:[%s1350_s1 + $0x100] sm:$0xff]   ;;  %475 = vmatprep.mubr.bf16.mxu0 %v819_v35 }
   0xd   :  { %913 = vmatpush3.bf16.msra.mxu1 %v1025_v11  ;;  %892 = vmatprep.subr.bf16.mxu0 %v1026_v12  ;;  %v1052_v41 = vld [vmem:[%s1350_s1 + $0x148] sm:$0xff]   ;;  %v1054_v43 = vld [vmem:[%s1350_s1 + $0x150] sm:$0xff]   ;;  %v1056_v45 = vld [vmem:[%s1350_s1 + $0x158] sm:$0xff]  }
   0xe   :  { %914 = vmatprep.subr.bf16.mxu1 %v1027_v13  ;;  %515 = vmatprep.mubr.bf16.mxu1 %v821_v37  ;;  %v1053_v42 = vld [vmem:[%s1350_s1 + $0x108] sm:$0xff]   ;;  %v1055_v44 = vld [vmem:[%s1350_s1 + $0x110] sm:$0xff]   ;;  %v1057_v46 = vld [vmem:[%s1350_s1 + $0x118] sm:$0xff]  }
   0xf   :  { %v1058_v47 = vld [vmem:[%s1350_s1 + $0x160] sm:$0xff]   ;;  %v1060_v49 = vld [vmem:[%s1350_s1 + $0x168] sm:$0xff]   ;;  %v21_v51 = vld [vmem:[%s1349_s0 + $0x10] sm:$0xff] }
  0x10   :  { %893 = vmatpush3.bf16.msra.mxu0 %v1028_v14  ;;  %v1059_v48 = vld [vmem:[%s1350_s1 + $0x120] sm:$0xff]   ;;  %v823_v52 = vcombine.high %v21_v51, %v21_v51  ;;  %v1069_v53 = vld [vmem:[%s1349_s0 + $0x18] ss:$0 sps:$4 sm:$0xff]   ;;  %v1061_v54 = vld [vmem:[%s1350_s1 + $0x128] sm:$0xff]  }
  0x11   :  { %915 = vmatpush3.bf16.msra.mxu1 %v1029_v15  ;;  %894 = vmatprep.subr.bf16.mxu0 %v1030_v16  ;;  %v1066_v50 = vld [vmem:[%s1350_s1 + $0x180] sm:$0xff]   ;;  %v1062_v55 = vld [vmem:[%s1350_s1 + $0x170] sm:$0xff]  }
  0x12   :  { %916 = vmatprep.subr.bf16.mxu1 %v1031_v17 }
  0x14   :  { %895 = vmatpush3.bf16.msra.mxu0 %v1032_v18 }
  0x15   :  { %917 = vmatpush3.bf16.msra.mxu1 %v1033_v19  ;;  %896 = vmatprep.subr.bf16.mxu0 %v1034_v20 }
  0x16   :  { %918 = vmatprep.subr.bf16.mxu1 %v1035_v21 }
  0x18   :  { %897 = vmatpush3.bf16.msra.mxu0 %v1036_v22 }
  0x19   :  { %919 = vmatpush3.bf16.msra.mxu1 %v1037_v23  ;;  %898 = vmatprep.subr.bf16.mxu0 %v1038_v24 }
  0x1a   :  { %920 = vmatprep.subr.bf16.mxu1 %v1039_v25 }
  0x1c   :  { %899 = vmatpush3.bf16.msra.mxu0 %v1040_v26 }
  0x1d   :  { %921 = vmatpush3.bf16.msra.mxu1 %v1041_v27  ;;  %900 = vmatprep.subr.bf16.mxu0 %v1042_v28 }
  0x1e   :  { %922 = vmatprep.subr.bf16.mxu1 %v1043_v29 }
  0x20   :  { %901 = vmatpush3.bf16.msra.mxu0 %v1044_v30 }
  0x21   :  { %923 = vmatpush3.bf16.msra.mxu1 %v1045_v31  ;;  %930 = vmatprep.subr.bf16.mxu0 %v1050_v38 }
  0x22   :  { %969 = vmatprep.subr.bf16.mxu1 %v1102_v40 }
  0x23   :  { %476 = vmatmul.mubr.bf16.vlgmr.msra.gmra.mrb[0].mxu0 %v818_v34 }
  0x24   :  { %516 = vmatmul.mubr.bf16.vlgmr.msra.gmra.mrb[0].mxu1 %v820_v36  ;;  %931 = vmatpush3.bf16.msra.mxu0 %v1051_v39 }
  0x25   :  { %971 = vmatprep.mubr.msk.bf16.mxu1 %vm1103_vm0, %v1102_v40  ;;  %932 = vmatprep.subr.bf16.mxu0 %v1052_v41 }
  0x26   :  { %970 = vmatpush3.bf16.msra.mxu1 %v1066_v50  ;;  %555 = vmatprep.mubr.bf16.mxu0 %v823_v52 }
  0x27   :  { %975 = vmatprep.subr.bf16.mxu1 %v1102_v40 }
  0x28   :  { %933 = vmatpush3.bf16.msra.mxu0 %v1053_v42 }
  0x29   :  { %934 = vmatprep.subr.bf16.mxu0 %v1054_v43 }
  0x2c   :  { %935 = vmatpush3.bf16.msra.mxu0 %v1055_v44  ;;  %972 = vmatmul.mubr.msk.bf16.vlgmr.msra.gmra.mrb[4].mxu1 %vm439_vm1, %v1069_v53 }
  0x2d   :  { %936 = vmatprep.subr.bf16.mxu0 %v1056_v45  ;;  %983 = vmatprep.mubr.msk.bf16.mxu1 %vm1103_vm0, %v1102_v40 }
  0x30   :  { %937 = vmatpush3.bf16.msra.mxu0 %v1057_v46 }
  0x31   :  { %938 = vmatprep.subr.bf16.mxu0 %v1058_v47 }
  0x34   :  { %939 = vmatpush3.bf16.msra.mxu0 %v1059_v48 }
  0x35   :  { %940 = vmatprep.subr.bf16.mxu0 %v1060_v49 }
  0x36   :  { %9 = vsyncpa [#allocation3], 0  ;;  %v1063_v56 = vld [vmem:[%s1350_s1 + $0x130] sm:$0xff]   ;;  %v1064_v57 = vld [vmem:[%s1350_s1 + $0x178] sm:$0xff]   ;;  %v822_v59 = vcombine.low %v21_v51, %v21_v51  ;;  %vm636_vm2 = vcmask 523264   ;;  %s1104_s30 = smov [#allocation2]  }
  0x37   :  { %v1065_v58 = vld [vmem:[%s1350_s1 + $0x138] sm:$0xff]   ;;  %v1070_v60 = vld [vmem:[%s1351_s2] sm:$0xff]   ;;  %v1071_v61 = vld [vmem:[%s1351_s2 + $0x8] sm:$0xff]   ;;  %s810_s5 = sshll.u32 %s1104_s30, 4  ;;  %vm802_vm3 = vcmask 80896   ;;  %s811_s5 = int_to_ptr.vmem [resolvable:$true] %s810_s5 }
  0x38   :  { %941 = vmatpush3.bf16.msra.mxu0 %v1061_v54  ;;  %976 = vmatpush3.bf16.msra.mxu1 %v1070_v60  ;;  %v1072_v62 = vld [vmem:[%s1351_s2 + $0x10] sm:$0xff]   ;;  %v1073_v63 = vld [vmem:[%s1351_s2 + $0x18] sm:$0xff]   ;;  %v1074_v23 = vld [vmem:[%s1352_s3] sm:$0xff]   ;;  %s1078_s6 = scalar_lea.vmem %s811_s5, 128  ;;  %p1083_p1 = scmp.lt.s32.totalorder %s811_s5, %s811_s5 }
  0x39   :  { %942 = vmatprep.subr.bf16.mxu0 %v1062_v55  ;;  %977 = vmatprep.subr.bf16.mxu1 %v1102_v40  ;;  %v1075_v24 = vld [vmem:[%s1352_s3 + $0x8] sm:$0xff]   ;;  %v1076_v25 = vld [vmem:[%s1352_s3 + $0x10] sm:$0xff]   ;;  %v1077_v32 = vld [vmem:[%s1352_s3 + $0x18] sm:$0xff]   ;;  %p1079_p0 = scmp.ne.s32.totalorder %s811_s5, %s1078_s6  ;;  %p1084_p2 = scmp.lt.s32.totalorder %s1078_s6, %s1078_s6 }
  0x3b   :  { %p1085_p3 = por %p1084_p2, %p1083_p1 }
  0x3c   :  { %943 = vmatpush3.bf16.msra.mxu0 %v1063_v56  ;;  %978 = vmatpush3.bf16.msra.mxu1 %v1071_v61 }
  0x3d   :  { %944 = vmatprep.subr.bf16.mxu0 %v1064_v57  ;;  %979 = vmatprep.subr.bf16.mxu1 %v1102_v40  ;;  %p1086_p4 = pnand %p1085_p3, %p1079_p0 }
  0x40   :  { %945 = vmatpush3.bf16.msra.mxu0 %v1065_v58  ;;  %980 = vmatpush3.bf16.msra.mxu1 %v1072_v62 }
  0x41   :  { %999 = vmatprep.subr.bf16.mxu0 %v1102_v40  ;;  %981 = vmatprep.subr.bf16.mxu1 %v1102_v40 }
  0x43   :  { %556 = vmatmul.mubr.bf16.vlgmr.msra.gmra.mrb[4].mxu0 %v822_v59 }
  0x44   :  { %1007 = vmatprep.mubr.msk.bf16.mxu0 %vm1103_vm0, %v1102_v40  ;;  %982 = vmatpush3.bf16.msra.mxu1 %v1073_v63 }
  0x45   :  { %987 = vmatprep.subr.bf16.mxu1 %v1102_v40  ;;  %1000 = vmatpush3.bf16.msra.mxu0 %v1074_v23 }
  0x46   :  { %1001 = vmatprep.subr.bf16.mxu0 %v1102_v40 }
  0x49   :  { %1002 = vmatpush3.bf16.msra.mxu0 %v1075_v24 }
  0x4a   :  { %1003 = vmatprep.subr.bf16.mxu0 %v1102_v40 }
  0x4d   :  { %1004 = vmatpush3.bf16.msra.mxu0 %v1076_v25 }
  0x4e   :  { %1005 = vmatprep.subr.bf16.mxu0 %v1102_v40 }
  0x51   :  { %1006 = vmatpush3.bf16.msra.mxu0 %v1077_v32 }
  0xf6   :  { %v902_v0 = vpop.f32.mrb[0].mxu0 }
  0xf7   :  { %v924_v1 = vpop.f32.mrb[0].mxu1  ;;  %v903_v2 = vpop.f32.mrb[1].mxu0 }
  0xf8   :  { %v925_v3 = vpop.f32.mrb[1].mxu1  ;;  %v904_v4 = vadd.f32 %v903_v2, %v902_v0  ;;  %v905_v6 = vpop.f32.mrb[2].mxu0 }
  0xf9   :  { %v926_v5 = vadd.f32 %v925_v3, %v924_v1  ;;  %v927_v7 = vpop.f32.mrb[2].mxu1  ;;  %v906_v8 = vpop.f32.mrb[3].mxu0 }
  0xfa   :  { %v928_v9 = vpop.f32.mrb[3].mxu1 }
  0xfb   :  { %v518_v10 = vadd.f32 %v926_v5, %v904_v4 }
  0xff   :  { %v597_v11 = vpop.f32.mrb[4].mxu1 }
 0x100   :  { %v973_v12 = vpop.f32.mrb[5].mxu1 }
 0x101   :  { %v600_v13 = vpop.f32.mrb[6].mxu1 }
 0x102   :  { %v974_v14 = vpop.f32.mrb[7].mxu1 }
 0x116   :  { %v946_v15 = vpop.f32.mrb[4].mxu0 }
 0x117   :  { %v947_v16 = vpop.f32.mrb[5].mxu0 }
 0x118   :  { %v948_v17 = vadd.f32 %v947_v16, %v946_v15  ;;  %v949_v18 = vpop.f32.mrb[6].mxu0 }
 0x119   :  { %v950_v19 = vpop.f32.mrb[7].mxu0 }
 0x11a   :  { %v558_v20 = vadd.f32 %v948_v17, %v518_v10 }
 0x11c   :  { %v598_v21 = vadd.f32 %v597_v11, %v558_v20 }
 0x11e   :  { %v603_v22 = vpack.c.bf16 %v598_v21, %v598_v21 }
 0x120   :  { %984 = vmatmul.mubr.msk.bf16.vlgmr.msra.gmra.mrb[8].mxu1 %vm636_vm2, %v603_v22 }
 0x121   :  { %988 = vmatpush3.bf16.msra.mxu1 %v1070_v60  ;;  %995 = vmatprep.mubr.msk.bf16.mxu1 %vm1103_vm0, %v1102_v40 }
 0x122   :  { %989 = vmatprep.subr.bf16.mxu1 %v1102_v40 }
 0x125   :  { %990 = vmatpush3.bf16.msra.mxu1 %v1071_v61 }
 0x126   :  { %991 = vmatprep.subr.bf16.mxu1 %v1102_v40 }
 0x129   :  { %992 = vmatpush3.bf16.msra.mxu1 %v1072_v62 }
 0x12a   :  { %993 = vmatprep.subr.bf16.mxu1 %v1102_v40 }
 0x12d   :  { %994 = vmatpush3.bf16.msra.mxu1 %v1073_v63 }
 0x1f3   :  { %v674_v26 = vpop.f32.mrb[8].mxu1 }
 0x1f4   :  { %v680_v27 = vmul.f32 %v674_v26, %v598_v21  ;;  %v985_v28 = vpop.f32.mrb[9].mxu1 }
 0x1f5   :  { %v677_v29 = vpop.f32.mrb[10].mxu1 }
 0x1f6   :  { %v681_v30 = vpack.c.bf16 %v680_v27, %v680_v27  ;;  %v986_v31 = vpop.f32.mrb[11].mxu1 }
 0x1f8   :  { %996 = vmatmul.mubr.msk.bf16.vlgmr.msra.gmra.mrb[12].mxu1 %vm636_vm2, %v681_v30 }
 0x2cb   :  { %v719_v33 = vpop.f32.mrb[12].mxu1 }
 0x2cc   :  { %v725_v34 = vmul.f32 %v719_v33, %v598_v21  ;;  %v997_v35 = vpop.f32.mrb[13].mxu1 }
 0x2cd   :  { %v722_v36 = vpop.f32.mrb[14].mxu1 }
 0x2ce   :  { %v726_v37 = vpack.c.bf16 %v725_v34, %v725_v34  ;;  %v998_v38 = vpop.f32.mrb[15].mxu1 }
 0x2d0   :  { %1008 = vmatmul.mubr.msk.bf16.vlgmr.msra.gmra.mrb[8].mxu0 %vm636_vm2, %v726_v37 }
 0x3a3   :  { %v796_v39 = vpop.f32.mrb[8].mxu0 }
 0x3a4   :  { %803 = vst.msk [vmem:[#allocation2] sm:$0xff] %vm802_vm3, %v796_v39  ;;  %v1009_v40 = vpop.f32.mrb[9].mxu0 }
 0x3a5   :  { %v799_v41 = vpop.f32.mrb[10].mxu0 }
 0x3a6   :  { %1089 = shalt.err (!%p1086_p4)
}
 0x3a7   :  { %s1090_s8 = scalar_lea.hbm %s1353_s4, 128 }
 0x3a8   :  { %p1091_p5 = scmp.ne.s32.totalorder %s1353_s4, %s1090_s8  ;;  %p1094_p6 = scmp.lt.u32.totalorder %s1090_s8, %s1353_s4 }
 0x3aa   :  { %p1096_p7 = pnand %p1094_p6, %p1091_p5 }
 0x3ac   :  { %1099 = shalt.err (!%p1096_p7)
}
 0x3ad   :  { %813 = dma.vmem_to_hbm [thread:$0]  %s811_s5, 128, %s1353_s4, [#allocation3]   ;;  %v1010_v42 = vpop.f32.mrb[11].mxu0 }
 0x3ae   :  { %1100 = dma.done.wait [#allocation3], 128  }
 0x3af   :  { %1101 = vsyncadd [#allocation3], 4294967168 }
 0x3b0   :  { %817 = vsyncpa [#allocation3], 1 }

</bundles_post_ra>
